<compile_context>
chip_gen: v6e
topology: v6e:2x2x1
jax: 0.10.0
libtpu: 0.0.40
codegen_flags: <defaults>
</compile_context>

<pallas_src>
import math

import jax
import jax.numpy as jnp
from jax.experimental import pallas as pl
from jax.experimental.pallas import tpu as pltpu


LANES = 128                             # TPU lane width (last-dim tile)
_TARGET_BLOCK_BYTES = 4 * 1024 * 1024   # ~4 MiB per buffer -> ~16 MiB total double-buffered
_VMEM_LIMIT_BYTES = 40 * 1024 * 1024    # 2x(in+out) buffers + headroom, < v7x 64 MiB


def _sublanes_for(dtype):
    """Native sublane tile height for the dtype (8/16/32 for 4/2/1-byte)."""
    itemsize = jnp.dtype(dtype).itemsize
    if itemsize >= 4:
        return 8
    if itemsize == 2:
        return 16
    return 32


def _copy_kernel(x_ref, o_ref):
    # Identity copy of one (block_rows, 128) tile through VMEM.
    o_ref[...] = x_ref[...]


def _pallas_flat_copy(flat_2d):
    """Stream a (rows, 128) slab through a Pallas identity-copy kernel."""
    rows, lanes = flat_2d.shape
    assert lanes == LANES
    dtype = flat_2d.dtype
    itemsize = jnp.dtype(dtype).itemsize
    sublanes = _sublanes_for(dtype)

    # Block rows from the byte budget, rounded down to the native sublane multiple.
    target_rows = max(
        sublanes,
        (_TARGET_BLOCK_BYTES // (LANES * itemsize)) // sublanes * sublanes,
    )

    # Never allocate a block (and its double buffers) larger than the array needs.
    rows_rounded = pl.cdiv(rows, sublanes) * sublanes
    block_rows = min(target_rows, rows_rounded)

    # cdiv grid: the partial last block (if any) is masked by Pallas — no
    # divisor search, block size stays large for every row count.
    grid = (pl.cdiv(rows, block_rows),)

    return pl.pallas_call(
        _copy_kernel,
        out_shape=jax.ShapeDtypeStruct((rows, LANES), dtype),
        grid_spec=pltpu.PrefetchScalarGridSpec(
            num_scalar_prefetch=0,
            grid=grid,
            in_specs=[pl.BlockSpec((block_rows, LANES), lambda i: (i, 0))],
            out_specs=pl.BlockSpec((block_rows, LANES), lambda i: (i, 0)),
        ),
        compiler_params=pltpu.CompilerParams(
            dimension_semantics=("parallel",),       # shards across TCs on v7x
            vmem_limit_bytes=_VMEM_LIMIT_BYTES,
        ),
    )(flat_2d)


def reshape_forward(x, target_shape):
    """Equivalent of Reshape(*target_shape)(x) == torch.reshape(x, (-1, *target_shape))."""
    total = math.prod(x.shape)
    tail = math.prod(target_shape)
    if tail == 0 or total % tail != 0:
        raise ValueError(f"cannot reshape {x.shape} into (-1, {target_shape})")
    lead = total // tail
    out_shape = (lead, *target_shape)

    # Row-major flatten (metadata-only in XLA; matches torch.reshape on a contiguous tensor).
    flat = jnp.reshape(x, (total,))

    # Pad only a ragged tail up to one 128-lane row. Common case: no pad at all.
    padded_total = pl.cdiv(total, LANES) * LANES
    needs_pad = padded_total != total
    if needs_pad:
        flat = jnp.pad(flat, (0, padded_total - total))
    flat_2d = jnp.reshape(flat, (padded_total // LANES, LANES))

    # Hot path: single streaming identity copy through the Pallas kernel.
    out_2d = _pallas_flat_copy(flat_2d)

    # Metadata glue: re-interpret shape (slice only if a tail pad was added).
    if needs_pad:
        out_flat = jnp.reshape(out_2d, (padded_total,))[:total]
    else:
        out_flat = jnp.reshape(out_2d, (total,))
    return jnp.reshape(out_flat, out_shape)


if __name__ == "__main__":
    # Module instance: Reshape(8, 64)  -> forward: torch.reshape(x, (-1, 8, 64))
    target_shape = (8, 64)

    # Input: NCHW, small shapes. total = 2*4*16*16 = 2048 = 4 * (8*64).
    key = jax.random.PRNGKey(0)
    x = jax.random.normal(key, (2, 4, 16, 16), dtype=jnp.float32)

    out = reshape_forward(x, target_shape)
    out = jax.block_until_ready(out)

    # Reference check against plain JAX reshape (same semantics as torch.reshape).
    ref = jnp.reshape(x, (-1, *target_shape))
    assert out.shape == ref.shape == (4, 8, 64), out.shape
    assert out.dtype == x.dtype
    assert bool(jnp.array_equal(out, ref))

    print("KERNEL_OK")
</pallas_src>

<mosaic_0001>
module attributes {stable_mosaic.version = 11 : i64} {
  func.func @_copy_kernel(%arg0: i32, %arg1: memref<16x128xf32, #tpu.memory_space<vmem>>, %arg2: memref<16x128xf32, #tpu.memory_space<vmem>>) attributes {dimension_semantics = [#tpu.dimension_semantics<parallel>], iteration_bounds = array<i64: 1>, scalar_prefetch = 0 : i64, scratch_operands = 0 : i64, tpu.core_type = #tpu.core_type<tc>, window_params = [{transform_indices = @transform_0, window_bounds = array<i64: 16, 128>}, {transform_indices = @transform_1, window_bounds = array<i64: 16, 128>}]} {
    %c0 = arith.constant 0 : index
    %c0_0 = arith.constant 0 : index
    %0 = vector.load %arg1[%c0, %c0_0] : memref<16x128xf32, #tpu.memory_space<vmem>>, vector<16x128xf32>
    %c0_1 = arith.constant 0 : index
    %c0_2 = arith.constant 0 : index
    %1 = vector.load %arg2[%c0_1, %c0_2] : memref<16x128xf32, #tpu.memory_space<vmem>>, vector<16x128xf32>
    tpu.vector_store %arg2[%c0_1, %c0_2], %0 {strides = array<i32>} : memref<16x128xf32, #tpu.memory_space<vmem>>, vector<16x128xf32>,
    return
  }
  func.func @transform_0(%arg0: i32) -> (i32, i32) {
    %c0_i32 = arith.constant 0 : i32
    %c0_i32_0 = arith.constant 0 : i32
    return %arg0, %c0_i32 : i32, i32
  }
  func.func @transform_1(%arg0: i32) -> (i32, i32) {
    %c0_i32 = arith.constant 0 : i32
    %c0_i32_0 = arith.constant 0 : i32
    return %arg0, %c0_i32 : i32, i32
  }
}

</mosaic_0001>

<bundles_post_ra>
// kernel: tpu_custom_call.1
= control target key start
LH: loop header
LB: loop body
LE: loop exit
PB: predicated region body
PF: predicated region fallthrough
CT: control target
= control target key end

     0   :  { %6 = vsyncpa [#allocation3], 0  ;;  %s112_s0 = inlined_call_operand.hbm [shape: f32[16,128], index: 0, kind: input, shape index: {}]   ;;  %s113_s1 = inlined_call_operand.hbm [shape: f32[16,128], index: 1, kind: output, shape index: {}]  }
   0x1   :  { %7 = vsyncpa [#allocation4], 0  ;;  %s92_s6 = smov [#allocation2]  }
   0x2   :  { %s13_s7 = sshll.u32 %s92_s6, 4  ;;  %s14_s7 = int_to_ptr.vmem [resolvable:$true] %s13_s7 }
   0x3   :  { %s56_s8 = scalar_lea.vmem %s14_s7, 256  ;;  %p61_p1 = scmp.lt.s32.totalorder %s14_s7, %s14_s7 }
   0x4   :  { %p57_p0 = scmp.ne.s32.totalorder %s14_s7, %s56_s8  ;;  %p62_p2 = scmp.lt.s32.totalorder %s56_s8, %s56_s8 }
   0x6   :  { %p63_p3 = por %p62_p2, %p61_p1 }
   0x8   :  { %p64_p4 = pnand %p63_p3, %p57_p0 }
   0xa   :  { %67 = shalt.err (!%p64_p4)
}
   0xb   :  { %s93_s9 = smov 128   ;;  %s94_s10 = smov 8  }
   0xc   :  { %19 = dma.hbm_to_vmem [thread:$0]  %s112_s0, 256, %s14_s7, [#allocation3], %s93_s9, %s93_s9, %s94_s10  }
   0xd   :  { %88 = dma.done.wait [#allocation3], 256  }
   0xe   :  { %89 = vsyncadd [#allocation3], 4294967040  ;;  %s95_s13 = smov [#allocation5]   ;;  %v23_v0 = vld [vmem:[#allocation2] sm:$0xff]  ;;  %v24_v1 = vld [vmem:[#allocation2 + $0x8] sm:$0xff] }
   0xf   :  { %s32_s14 = sshll.u32 %s95_s13, 4  ;;  %25 = vst [vmem:[#allocation5] sm:$0xff] %v23_v0  ;;  %26 = vst [vmem:[#allocation5 + $0x8] sm:$0xff] %v24_v1  ;;  %s33_s14 = int_to_ptr.vmem [resolvable:$true] %s32_s14 }
  0x10   :  { %s68_s15 = scalar_lea.vmem %s33_s14, 256  ;;  %p73_p6 = scmp.lt.s32.totalorder %s33_s14, %s33_s14 }
  0x11   :  { %p69_p5 = scmp.ne.s32.totalorder %s33_s14, %s68_s15  ;;  %p74_p7 = scmp.lt.s32.totalorder %s68_s15, %s68_s15 }
  0x13   :  { %p75_p8 = por %p74_p7, %p73_p6 }
  0x15   :  { %p76_p9 = pnand %p75_p8, %p69_p5 }
  0x17   :  { %79 = shalt.err (!%p76_p9)
}
  0x18   :  { %38 = dma.vmem_to_hbm [thread:$0]  %s33_s14, 256, %s113_s1, [#allocation4], %s93_s9, %s93_s9, %s94_s10  }
  0x19   :  { %90 = dma.done.wait [#allocation4], 256  }
  0x1a   :  { %91 = vsyncadd [#allocation4], 4294967040 }
  0x1b   :  { %42 = vsyncpa [#allocation3], 1 }
  0x1c   :  { %43 = vsyncpa [#allocation4], 1 }

</bundles_post_ra>
